<compile_context>
chip_gen: v7x
topology: tpu7x:2x2x1
jax: 0.10.0
libtpu: 0.0.40
codegen_flags: <defaults>
</compile_context>

<pallas_src>
import functools

import jax
import jax.numpy as jnp
from jax.experimental import pallas as pl
from jax.experimental.pallas import tpu as pltpu


_PCOLS = 20  # packed per-primitive parameter columns (see _pack_params)


# -----------------------------------------------------------------------------
# Kernel
# -----------------------------------------------------------------------------
def _occupancy_kernel(x_ref, p_ref, *rest, sharpness, use_bf16, use_mxu):
    f32 = jnp.float32
    one = f32(1.0)
    tiny = f32(1e-6)
    cdt = jnp.bfloat16 if use_bf16 else jnp.float32

    if use_mxu:
        l_ref, o_ref = rest
    else:
        (o_ref,) = rest

    x = x_ref[0]          # (3, TN) — or (4, TN) with a homogeneous ones row (MXU path)
    P = p_ref[0]          # (Mp, 20)  packed per-primitive params
    Mp = P.shape[0]
    TN = x.shape[1]

    # X = ((X > 0)*2 - 1) * max(|X|, 1e-6)   (sign(0) == -1, exactly like torch;
    # the homogeneous "1" row maps to itself under this clamp).
    sgn = jnp.where(x > 0, one, -one)
    xs = sgn * jnp.maximum(jnp.abs(x), tiny)

    if use_mxu:
        # p = [R | -R@t] @ [x; 1] on the otherwise-idle MXU (K=4 is tiny, but the
        # vector-extended slot is free).  HIGHEST precision requested so the f32
        # result is not demoted to a single bf16 pass.
        # TODO(synk): validate Mosaic lowering/precision of this small f32 matmul
        #             on target hardware before making it the default.
        L = l_ref[0]                                           # (3*Mp, 4)
        p_all = jnp.dot(L, xs, preferred_element_type=jnp.float32,
                        precision=jax.lax.Precision.HIGHEST)   # (3*Mp, TN)
        px = p_all[0 * Mp:1 * Mp]
        py = p_all[1 * Mp:2 * Mp]
        pz = p_all[2 * Mp:3 * Mp]
    else:
        # VPU path. Hoist the sublane broadcasts of the x rows (each used 3x;
        # JAX does not CSE broadcast_in_dim).
        x0 = jnp.broadcast_to(xs[0:1, :], (Mp, TN))
        x1 = jnp.broadcast_to(xs[1:2, :], (Mp, TN))
        x2 = jnp.broadcast_to(xs[2:3, :], (Mp, TN))

        def prow(r):       # R row r dotted with x, minus (R@t) row r
            return (P[:, 3 * r + 0:3 * r + 1] * x0 +
                    P[:, 3 * r + 1:3 * r + 2] * x1 +
                    P[:, 3 * r + 2:3 * r + 3] * x2 -
                    P[:, 9 + r:10 + r])

        px, py, pz = prow(0), prow(1), prow(2)                 # each (Mp, TN)

    inv_a1 = P[:, 12:13]; inv_a2 = P[:, 13:14]; inv_a3 = P[:, 14:15]
    k1_a3 = P[:, 15:16]; k2_a3 = P[:, 16:17]
    p_2e2 = P[:, 17:18]; p_e2e1 = P[:, 18:19]; p_2e1 = P[:, 19:20]

    # Un-taper.  Only |px/fx| and |py/fy| are used downstream, so clamp the
    # magnitude only (identical math to the sign-preserving clamp, fewer VALU
    # ops).  Exact divide: the approx EUP reciprocal error is amplified by the
    # 2/e2 exponent and exceeded the f32 tolerance.
    ax = jnp.maximum(jnp.abs(px) /
                     jnp.maximum(jnp.abs(k1_a3 * pz + one), tiny) * inv_a1, tiny)
    ay = jnp.maximum(jnp.abs(py) /
                     jnp.maximum(jnp.abs(k2_a3 * pz + one), tiny) * inv_a2, tiny)
    az = jnp.maximum(jnp.abs(pz) * inv_a3, tiny)

    # Superquadric inside-outside function.  bf16 transcendentals are opt-in
    # (extra casts land on the binding VALU slot and cost accuracy near F~1).
    def powp(base, expc):                                      # base > 0
        return jnp.exp(expc * jnp.log(base.astype(cdt))).astype(f32)

    p_2e2c = jnp.broadcast_to(p_2e2.astype(cdt), (Mp, TN))     # used twice: hoist
    t_xy = powp(ax, p_2e2c) + powp(ay, p_2e2c)
    F = powp(jnp.maximum(t_xy, tiny), p_e2e1.astype(cdt)) + powp(az, p_2e1.astype(cdt))

    o_ref[0] = (f32(sharpness) * (one - F)).astype(o_ref.dtype)   # (Mp, TN)


# -----------------------------------------------------------------------------
# Per-primitive parameter packing (O(B*M), done once in the wrapper)
# -----------------------------------------------------------------------------
def _pack_params(translation, rotation, size, shape_eps, taper, Mp, build_mxu_lhs):
    f32 = jnp.float32
    B, M, _ = translation.shape
    t = translation.astype(f32)
    R = rotation.astype(f32).reshape(B, M, 3, 3)
    a = size.astype(f32)
    e = shape_eps.astype(f32)
    k = taper.astype(f32)

    if Mp > M:  # pad with benign identity primitives (sliced off afterwards)
        pad = Mp - M
        t = jnp.concatenate([t, jnp.zeros((B, pad, 3), f32)], axis=1)
        eye = jnp.broadcast_to(jnp.eye(3, dtype=f32), (B, pad, 3, 3))
        R = jnp.concatenate([R, eye], axis=1)
        a = jnp.concatenate([a, jnp.ones((B, pad, 3), f32)], axis=1)
        e = jnp.concatenate([e, jnp.ones((B, pad, 2), f32)], axis=1)
        k = jnp.concatenate([k, jnp.zeros((B, pad, 2), f32)], axis=1)

    # R @ t via explicit multiply-add: keeps this tiny contraction exact f32
    # (einsum at default TPU precision is a single bf16 MXU pass).
    Rt = jnp.sum(R * t[:, :, None, :], axis=-1)            # (B, Mp, 3)

    inv_a = 1.0 / a
    k_over_a3 = k * inv_a[..., 2:3]                         # (k1/a3, k2/a3)
    two_over_e2 = 2.0 / e[..., 1:2]
    e2_over_e1 = e[..., 1:2] / e[..., 0:1]
    two_over_e1 = 2.0 / e[..., 0:1]

    # cols: 0-8 R (row-major), 9-11 R@t, 12-14 1/a, 15-16 k/a3, 17 2/e2,
    #       18 e2/e1, 19 2/e1
    params = jnp.concatenate(
        [R.reshape(B, Mp, 9), Rt, inv_a, k_over_a3,
         two_over_e2, e2_over_e1, two_over_e1], axis=-1)    # (B, Mp, 20)

    lhs = None
    if build_mxu_lhs:
        # rows grouped per output axis: [x-rows(Mp); y-rows(Mp); z-rows(Mp)],
        # each row = [R[m, k, :], -(R@t)[m, k]]  ->  p = LHS @ [x; 1]
        lhs = jnp.concatenate([R, -Rt[..., None]], axis=-1)         # (B, Mp, 3, 4)
        lhs = jnp.transpose(lhs, (0, 2, 1, 3)).reshape(B, 3 * Mp, 4)
    return params, lhs


# -----------------------------------------------------------------------------
# Wrapper
# -----------------------------------------------------------------------------
def occupancy_function(X, translation, rotation, size, shape_eps, taper,
                       sharpness=10.0, *, tile_n=2048, rotate_on_mxu=False,
                       use_bf16_transcendentals=False, return_layout="bnm",
                       out_dtype=jnp.float32, interpret=False):
    """X: (B, N, 3); translation: (B, M, 3); rotation: (B, M, 3, 3) DCM;
    size: (B, M, 3); shape_eps: (B, M, 2); taper: (B, M, 2).
    Returns sharpness * (1 - F): (B, N, M) for return_layout="bnm" (torch
    semantics) or (B, M, N) for "bmn" (recommended for fused consumers: skips
    a full extra HBM transpose pass)."""
    B, N, _ = X.shape
    M = translation.shape[1]

    # Pad M to a multiple of 8 (full sublane occupancy), N to a multiple of TN.
    Mp = max(8, ((M + 7) // 8) * 8)
    N128 = ((N + 127) // 128) * 128

    try:  # generation-aware VMEM budget (v7x: 64 MiB/TC; v5e/v6e: 128 MiB)
        vmem_cap = int(pltpu.get_tpu_info().vmem_capacity_bytes)
    except Exception:
        vmem_cap = 128 * 2**20

    # Couple TN to Mp so one (Mp, TN) f32 temporary stays <= ~1-2 MiB
    # (bounds live-vreg pressure / spill traffic), floor of 512 lanes.
    temp_budget = (1 if vmem_cap <= 64 * 2**20 else 2) * 2**20
    tn_cap = max(512, (temp_budget // (4 * Mp)) // 128 * 128)
    TN = max(128, (min(int(tile_n), N128, tn_cap) // 128) * 128)
    Np = ((N128 + TN - 1) // TN) * TN
    n_tiles = Np // TN

    # v7x has 2 TensorCores: avoid a single-step grid when it is cheap to split.
    if vmem_cap <= 64 * 2**20 and B * n_tiles == 1 and TN >= 256:
        TN = max(128, (TN // 2) // 128 * 128)
        Np = ((N128 + TN - 1) // TN) * TN
        n_tiles = Np // TN

    XR = 4 if rotate_on_mxu else 3
    x_t = jnp.transpose(X.astype(jnp.float32), (0, 2, 1))     # (B, 3, N)
    if rotate_on_mxu:                                          # homogeneous "1" row
        x_t = jnp.concatenate([x_t, jnp.ones((B, 1, N), jnp.float32)], axis=1)
    if Np > N:
        x_t = jnp.pad(x_t, ((0, 0), (0, 0), (0, Np - N)))

    params, lhs = _pack_params(translation, rotation, size, shape_eps, taper,
                               Mp, rotate_on_mxu)

    kernel = functools.partial(_occupancy_kernel,
                               sharpness=float(sharpness),
                               use_bf16=bool(use_bf16_transcendentals),
                               use_mxu=bool(rotate_on_mxu))

    in_specs = [pl.BlockSpec((1, XR, TN), lambda b, n: (b, 0, n)),
                pl.BlockSpec((1, Mp, _PCOLS), lambda b, n: (b, 0, 0))]
    args = [x_t, params]
    if rotate_on_mxu:
        in_specs.append(pl.BlockSpec((1, 3 * Mp, 4), lambda b, n: (b, 0, 0)))
        args.append(lhs)

    grid_spec = pltpu.PrefetchScalarGridSpec(
        num_scalar_prefetch=0,
        grid=(B, n_tiles),
        in_specs=in_specs,
        out_specs=pl.BlockSpec((1, Mp, TN), lambda b, n: (b, 0, n)),
    )

    out_bytes = jnp.dtype(out_dtype).itemsize
    # double-buffered inputs/outputs + ~14 live (Mp, TN) f32 temporaries
    tile_bytes = (4 * (2 * XR * TN + 2 * Mp * _PCOLS + 14 * Mp * TN
                       + (2 * 3 * Mp * 4 if rotate_on_mxu else 0))
                  + out_bytes * 2 * Mp * TN)
    vmem_limit = int(min(0.7 * vmem_cap, max(32 * 2**20, 2 * tile_bytes)))

    cost = pl.CostEstimate(
        flops=int(60 * B * Mp * Np),
        transcendentals=int(8 * B * Mp * Np),
        bytes_accessed=int(4 * (XR * B * Np + B * Mp * _PCOLS)
                           + out_bytes * B * Mp * Np),
    )

    out_mn = pl.pallas_call(
        kernel,
        out_shape=jax.ShapeDtypeStruct((B, Mp, Np), out_dtype),
        grid_spec=grid_spec,
        compiler_params=pltpu.CompilerParams(
            dimension_semantics=("parallel", "parallel"),
            vmem_limit_bytes=vmem_limit),
        cost_estimate=cost,
        interpret=interpret,
    )(*args)

    out_mn = out_mn[:, :M, :N]                 # drop M/N padding (no-op if none)
    if return_layout == "bmn":
        return out_mn                          # lane-dense, no extra HBM pass
    return jnp.transpose(out_mn, (0, 2, 1))    # (B, N, M) -- torch module layout


# -----------------------------------------------------------------------------
# Pure-JAX reference (exact f32, no MXU-precision ambiguity, for sanity checks)
# -----------------------------------------------------------------------------
def occupancy_reference(X, translation, rotation, size, shape_eps, taper,
                        sharpness=10.0):
    tiny = 1e-6
    sgn = jnp.where(X > 0, 1.0, -1.0)
    xs = sgn * jnp.maximum(jnp.abs(X), tiny)                      # (B, N, 3)
    diff = xs[:, :, None, :] - translation[:, None, :, :]         # (B, N, M, 3)
    # explicit multiply-add so this tiny contraction never drops to a bf16 MXU pass
    p = jnp.sum(rotation[:, None, :, :, :] * diff[:, :, :, None, :], axis=-1)
    a = size[:, None, :, :]
    e1 = shape_eps[:, None, :, 0]
    e2 = shape_eps[:, None, :, 1]
    k1 = taper[:, None, :, 0]
    k2 = taper[:, None, :, 1]
    fx = k1 * p[..., 2] / a[..., 2] + 1.0
    fy = k2 * p[..., 2] / a[..., 2] + 1.0
    fx = jnp.where(jnp.abs(fx) < tiny, jnp.where(fx >= 0, tiny, -tiny), fx)
    fy = jnp.where(jnp.abs(fy) < tiny, jnp.where(fy >= 0, tiny, -tiny), fy)
    ux = jnp.maximum(jnp.abs(p[..., 0] / fx) / a[..., 0], tiny)
    uy = jnp.maximum(jnp.abs(p[..., 1] / fy) / a[..., 1], tiny)
    uz = jnp.maximum(jnp.abs(p[..., 2]) / a[..., 2], tiny)
    t_xy = ux ** (2.0 / e2) + uy ** (2.0 / e2)
    F = jnp.maximum(t_xy, tiny) ** (e2 / e1) + uz ** (2.0 / e1)
    return sharpness * (1.0 - F)


# -----------------------------------------------------------------------------
if __name__ == "__main__":
    key = jax.random.PRNGKey(0)
    B, N, M = 2, 300, 5        # batch, points (not 128-aligned), primitives (<8)

    kx, kt, kq, ks, ke, kp = jax.random.split(key, 6)

    X = jax.random.normal(kx, (B, N, 3), dtype=jnp.float32)
    translation = 0.2 * jax.random.normal(kt, (B, M, 3), dtype=jnp.float32)

    # Rotation DCM from random unit quaternions (glue, plain JAX).
    q = jax.random.normal(kq, (B, M, 4), dtype=jnp.float32)
    q = q / jnp.linalg.norm(q, axis=-1, keepdims=True)
    w, x_, y_, z_ = q[..., 0], q[..., 1], q[..., 2], q[..., 3]
    rotation = jnp.stack([
        1 - 2 * (y_ ** 2 + z_ ** 2), 2 * (x_ * y_ - w * z_), 2 * (x_ * z_ + w * y_),
        2 * (x_ * y_ + w * z_), 1 - 2 * (x_ ** 2 + z_ ** 2), 2 * (y_ * z_ - w * x_),
        2 * (x_ * z_ - w * y_), 2 * (y_ * z_ + w * x_), 1 - 2 * (x_ ** 2 + y_ ** 2),
    ], axis=-1).reshape(B, M, 3, 3)

    size = 0.5 + 0.7 * jax.random.uniform(ks, (B, M, 3), dtype=jnp.float32)
    shape_eps = 0.5 + 1.0 * jax.random.uniform(ke, (B, M, 2), dtype=jnp.float32)
    taper = 0.2 * (jax.random.uniform(kp, (B, M, 2), dtype=jnp.float32) - 0.5)

    ref = occupancy_reference(X, translation, rotation, size, shape_eps, taper,
                              sharpness=10.0)

    def max_rel(out_bnm):
        return float(jnp.max(jnp.abs(out_bnm - ref) / (jnp.abs(ref) + 1.0)))

    # --- 1) default path (f32, VPU rotation), multi-tile grid (TN=128) --------
    out1 = jax.block_until_ready(
        occupancy_function(X, translation, rotation, size, shape_eps, taper,
                           sharpness=10.0, tile_n=128))
    assert out1.shape == (B, N, M)
    assert bool(jnp.all(jnp.isfinite(out1)))
    assert max_rel(out1) < 3e-2, f"default path mismatch: {max_rel(out1)}"

    # --- 2) default tile size, lane-dense "bmn" layout (no output transpose) --
    out2 = jax.block_until_ready(
        occupancy_function(X, translation, rotation, size, shape_eps, taper,
                           sharpness=10.0, return_layout="bmn"))
    assert out2.shape == (B, M, N)
    err2 = float(jnp.max(jnp.abs(jnp.transpose(out2, (0, 2, 1)) - ref)
                         / (jnp.abs(ref) + 1.0)))
    assert err2 < 3e-2, f"bmn layout mismatch: {err2}"

    # --- 3) MXU-rotation path (opt-in); validated under interpret mode --------
    out3 = jax.block_until_ready(
        occupancy_function(X, translation, rotation, size, shape_eps, taper,
                           sharpness=10.0, rotate_on_mxu=True, interpret=True))
    assert out3.shape == (B, N, M)
    assert max_rel(out3) < 3e-2, f"MXU path mismatch: {max_rel(out3)}"

    # --- 4) bf16 transcendentals (opt-in, reduced precision): shape/finiteness -
    out4 = jax.block_until_ready(
        occupancy_function(X, translation, rotation, size, shape_eps, taper,
                           sharpness=10.0, use_bf16_transcendentals=True))
    assert out4.shape == (B, N, M)
    assert bool(jnp.all(jnp.isfinite(out4)))

    print("KERNEL_OK")
</pallas_src>

<mosaic_0001>
module attributes {stable_mosaic.version = 11 : i64} {
  func.func @_occupancy_kernel(%arg0: i32, %arg1: i32, %arg2: memref<1x3x128xf32, #tpu.memory_space<vmem>>, %arg3: memref<1x8x20xf32, #tpu.memory_space<vmem>>, %arg4: memref<1x8x128xf32, #tpu.memory_space<vmem>>) attributes {dimension_semantics = [#tpu.dimension_semantics<parallel>, #tpu.dimension_semantics<parallel>], iteration_bounds = array<i64: 2, 3>, scalar_prefetch = 0 : i64, scratch_operands = 0 : i64, tpu.core_type = #tpu.core_type<tc>, window_params = [{transform_indices = @transform_0, window_bounds = array<i64: 1, 3, 128>}, {transform_indices = @transform_1, window_bounds = array<i64: 1, 8, 20>}, {transform_indices = @transform_2, window_bounds = array<i64: 1, 8, 128>}]} {
    %c0 = arith.constant 0 : index
    %c0_0 = arith.constant 0 : index
    %c0_1 = arith.constant 0 : index
    %0 = vector.load %arg2[%c0, %c0_0, %c0_1] : memref<1x3x128xf32, #tpu.memory_space<vmem>>, vector<1x3x128xf32>
    %1 = vector.shape_cast %0 : vector<1x3x128xf32> to vector<3x128xf32>
    %c0_2 = arith.constant 0 : index
    %c0_3 = arith.constant 0 : index
    %c0_4 = arith.constant 0 : index
    %2 = vector.load %arg3[%c0_2, %c0_3, %c0_4] : memref<1x8x20xf32, #tpu.memory_space<vmem>>, vector<1x8x20xf32>
    %3 = vector.shape_cast %2 : vector<1x8x20xf32> to vector<8x20xf32>
    %cst = arith.constant 0.000000e+00 : f32
    %4 = vector.broadcast %cst : f32 to vector<3x128xf32>
    %5 = arith.cmpf ogt, %1, %4 : vector<3x128xf32>
    %cst_5 = arith.constant 0.000000e+00 : f32
    %cst_6 = arith.constant 1.000000e+00 : f32
    %6 = arith.subf %cst_5, %cst_6 : f32
    %cst_7 = arith.constant 1.000000e+00 : f32
    %7 = vector.broadcast %cst_7 : f32 to vector<3x128xf32>
    %8 = vector.broadcast %6 : f32 to vector<3x128xf32>
    %9 = arith.select %5, %7, %8 : vector<3x128xi1>, vector<3x128xf32>
    %10 = math.absf %1 : vector<3x128xf32>
    %cst_8 = arith.constant 9.99999997E-7 : f32
    %11 = vector.broadcast %cst_8 : f32 to vector<3x128xf32>
    %12 = arith.maximumf %10, %11 : vector<3x128xf32>
    %13 = arith.mulf %9, %12 : vector<3x128xf32>
    %14 = vector.extract_strided_slice %13 {offsets = [0, 0], sizes = [1, 128], strides = [1, 1]} : vector<3x128xf32> to vector<1x128xf32>
    %15 = vector.shape_cast %14 : vector<1x128xf32> to vector<1x128xf32>
    %16 = vector.broadcast %15 : vector<1x128xf32> to vector<8x128xf32>
    %17 = vector.extract_strided_slice %13 {offsets = [1, 0], sizes = [1, 128], strides = [1, 1]} : vector<3x128xf32> to vector<1x128xf32>
    %18 = vector.shape_cast %17 : vector<1x128xf32> to vector<1x128xf32>
    %19 = vector.broadcast %18 : vector<1x128xf32> to vector<8x128xf32>
    %20 = vector.extract_strided_slice %13 {offsets = [2, 0], sizes = [1, 128], strides = [1, 1]} : vector<3x128xf32> to vector<1x128xf32>
    %21 = vector.shape_cast %20 : vector<1x128xf32> to vector<1x128xf32>
    %22 = vector.broadcast %21 : vector<1x128xf32> to vector<8x128xf32>
    %23 = vector.extract_strided_slice %3 {offsets = [0, 0], sizes = [8, 1], strides = [1, 1]} : vector<8x20xf32> to vector<8x1xf32>
    %24 = vector.broadcast %23 : vector<8x1xf32> to vector<8x128xf32>
    %25 = arith.mulf %24, %16 : vector<8x128xf32>
    %26 = vector.extract_strided_slice %3 {offsets = [0, 1], sizes = [8, 1], strides = [1, 1]} : vector<8x20xf32> to vector<8x1xf32>
    %27 = vector.broadcast %26 : vector<8x1xf32> to vector<8x128xf32>
    %28 = arith.mulf %27, %19 : vector<8x128xf32>
    %29 = arith.addf %25, %28 : vector<8x128xf32>
    %30 = vector.extract_strided_slice %3 {offsets = [0, 2], sizes = [8, 1], strides = [1, 1]} : vector<8x20xf32> to vector<8x1xf32>
    %31 = vector.broadcast %30 : vector<8x1xf32> to vector<8x128xf32>
    %32 = arith.mulf %31, %22 : vector<8x128xf32>
    %33 = arith.addf %29, %32 : vector<8x128xf32>
    %34 = vector.extract_strided_slice %3 {offsets = [0, 9], sizes = [8, 1], strides = [1, 1]} : vector<8x20xf32> to vector<8x1xf32>
    %35 = vector.broadcast %34 : vector<8x1xf32> to vector<8x128xf32>
    %36 = arith.subf %33, %35 : vector<8x128xf32>
    %37 = vector.extract_strided_slice %3 {offsets = [0, 3], sizes = [8, 1], strides = [1, 1]} : vector<8x20xf32> to vector<8x1xf32>
    %38 = vector.broadcast %37 : vector<8x1xf32> to vector<8x128xf32>
    %39 = arith.mulf %38, %16 : vector<8x128xf32>
    %40 = vector.extract_strided_slice %3 {offsets = [0, 4], sizes = [8, 1], strides = [1, 1]} : vector<8x20xf32> to vector<8x1xf32>
    %41 = vector.broadcast %40 : vector<8x1xf32> to vector<8x128xf32>
    %42 = arith.mulf %41, %19 : vector<8x128xf32>
    %43 = arith.addf %39, %42 : vector<8x128xf32>
    %44 = vector.extract_strided_slice %3 {offsets = [0, 5], sizes = [8, 1], strides = [1, 1]} : vector<8x20xf32> to vector<8x1xf32>
    %45 = vector.broadcast %44 : vector<8x1xf32> to vector<8x128xf32>
    %46 = arith.mulf %45, %22 : vector<8x128xf32>
    %47 = arith.addf %43, %46 : vector<8x128xf32>
    %48 = vector.extract_strided_slice %3 {offsets = [0, 10], sizes = [8, 1], strides = [1, 1]} : vector<8x20xf32> to vector<8x1xf32>
    %49 = vector.broadcast %48 : vector<8x1xf32> to vector<8x128xf32>
    %50 = arith.subf %47, %49 : vector<8x128xf32>
    %51 = vector.extract_strided_slice %3 {offsets = [0, 6], sizes = [8, 1], strides = [1, 1]} : vector<8x20xf32> to vector<8x1xf32>
    %52 = vector.broadcast %51 : vector<8x1xf32> to vector<8x128xf32>
    %53 = arith.mulf %52, %16 : vector<8x128xf32>
    %54 = vector.extract_strided_slice %3 {offsets = [0, 7], sizes = [8, 1], strides = [1, 1]} : vector<8x20xf32> to vector<8x1xf32>
    %55 = vector.broadcast %54 : vector<8x1xf32> to vector<8x128xf32>
    %56 = arith.mulf %55, %19 : vector<8x128xf32>
    %57 = arith.addf %53, %56 : vector<8x128xf32>
    %58 = vector.extract_strided_slice %3 {offsets = [0, 8], sizes = [8, 1], strides = [1, 1]} : vector<8x20xf32> to vector<8x1xf32>
    %59 = vector.broadcast %58 : vector<8x1xf32> to vector<8x128xf32>
    %60 = arith.mulf %59, %22 : vector<8x128xf32>
    %61 = arith.addf %57, %60 : vector<8x128xf32>
    %62 = vector.extract_strided_slice %3 {offsets = [0, 11], sizes = [8, 1], strides = [1, 1]} : vector<8x20xf32> to vector<8x1xf32>
    %63 = vector.broadcast %62 : vector<8x1xf32> to vector<8x128xf32>
    %64 = arith.subf %61, %63 : vector<8x128xf32>
    %65 = vector.extract_strided_slice %3 {offsets = [0, 12], sizes = [8, 1], strides = [1, 1]} : vector<8x20xf32> to vector<8x1xf32>
    %66 = vector.extract_strided_slice %3 {offsets = [0, 13], sizes = [8, 1], strides = [1, 1]} : vector<8x20xf32> to vector<8x1xf32>
    %67 = vector.extract_strided_slice %3 {offsets = [0, 14], sizes = [8, 1], strides = [1, 1]} : vector<8x20xf32> to vector<8x1xf32>
    %68 = vector.extract_strided_slice %3 {offsets = [0, 15], sizes = [8, 1], strides = [1, 1]} : vector<8x20xf32> to vector<8x1xf32>
    %69 = vector.extract_strided_slice %3 {offsets = [0, 16], sizes = [8, 1], strides = [1, 1]} : vector<8x20xf32> to vector<8x1xf32>
    %70 = vector.extract_strided_slice %3 {offsets = [0, 17], sizes = [8, 1], strides = [1, 1]} : vector<8x20xf32> to vector<8x1xf32>
    %71 = vector.extract_strided_slice %3 {offsets = [0, 18], sizes = [8, 1], strides = [1, 1]} : vector<8x20xf32> to vector<8x1xf32>
    %72 = vector.extract_strided_slice %3 {offsets = [0, 19], sizes = [8, 1], strides = [1, 1]} : vector<8x20xf32> to vector<8x1xf32>
    %73 = math.absf %36 : vector<8x128xf32>
    %74 = vector.broadcast %68 : vector<8x1xf32> to vector<8x128xf32>
    %75 = arith.mulf %74, %64 : vector<8x128xf32>
    %cst_9 = arith.constant 1.000000e+00 : f32
    %76 = vector.broadcast %cst_9 : f32 to vector<8x128xf32>
    %77 = arith.addf %75, %76 : vector<8x128xf32>
    %78 = math.absf %77 : vector<8x128xf32>
    %cst_10 = arith.constant 9.99999997E-7 : f32
    %79 = vector.broadcast %cst_10 : f32 to vector<8x128xf32>
    %80 = arith.maximumf %78, %79 : vector<8x128xf32>
    %81 = arith.divf %73, %80 : vector<8x128xf32>
    %82 = vector.broadcast %65 : vector<8x1xf32> to vector<8x128xf32>
    %83 = arith.mulf %81, %82 : vector<8x128xf32>
    %cst_11 = arith.constant 9.99999997E-7 : f32
    %84 = vector.broadcast %cst_11 : f32 to vector<8x128xf32>
    %85 = arith.maximumf %83, %84 : vector<8x128xf32>
    %86 = math.absf %50 : vector<8x128xf32>
    %87 = vector.broadcast %69 : vector<8x1xf32> to vector<8x128xf32>
    %88 = arith.mulf %87, %64 : vector<8x128xf32>
    %cst_12 = arith.constant 1.000000e+00 : f32
    %89 = vector.broadcast %cst_12 : f32 to vector<8x128xf32>
    %90 = arith.addf %88, %89 : vector<8x128xf32>
    %91 = math.absf %90 : vector<8x128xf32>
    %cst_13 = arith.constant 9.99999997E-7 : f32
    %92 = vector.broadcast %cst_13 : f32 to vector<8x128xf32>
    %93 = arith.maximumf %91, %92 : vector<8x128xf32>
    %94 = arith.divf %86, %93 : vector<8x128xf32>
    %95 = vector.broadcast %66 : vector<8x1xf32> to vector<8x128xf32>
    %96 = arith.mulf %94, %95 : vector<8x128xf32>
    %cst_14 = arith.constant 9.99999997E-7 : f32
    %97 = vector.broadcast %cst_14 : f32 to vector<8x128xf32>
    %98 = arith.maximumf %96, %97 : vector<8x128xf32>
    %99 = math.absf %64 : vector<8x128xf32>
    %100 = vector.broadcast %67 : vector<8x1xf32> to vector<8x128xf32>
    %101 = arith.mulf %99, %100 : vector<8x128xf32>
    %cst_15 = arith.constant 9.99999997E-7 : f32
    %102 = vector.broadcast %cst_15 : f32 to vector<8x128xf32>
    %103 = arith.maximumf %101, %102 : vector<8x128xf32>
    %104 = vector.shape_cast %70 : vector<8x1xf32> to vector<8x1xf32>
    %105 = vector.broadcast %104 : vector<8x1xf32> to vector<8x128xf32>
    %106 = math.log %85 : vector<8x128xf32>
    %107 = arith.mulf %105, %106 : vector<8x128xf32>
    %108 = math.exp %107 : vector<8x128xf32>
    %109 = math.log %98 : vector<8x128xf32>
    %110 = arith.mulf %105, %109 : vector<8x128xf32>
    %111 = math.exp %110 : vector<8x128xf32>
    %112 = arith.addf %108, %111 : vector<8x128xf32>
    %cst_16 = arith.constant 9.99999997E-7 : f32
    %113 = vector.broadcast %cst_16 : f32 to vector<8x128xf32>
    %114 = arith.maximumf %112, %113 : vector<8x128xf32>
    %115 = math.log %114 : vector<8x128xf32>
    %116 = vector.broadcast %71 : vector<8x1xf32> to vector<8x128xf32>
    %117 = arith.mulf %116, %115 : vector<8x128xf32>
    %118 = math.exp %117 : vector<8x128xf32>
    %119 = math.log %103 : vector<8x128xf32>
    %120 = vector.broadcast %72 : vector<8x1xf32> to vector<8x128xf32>
    %121 = arith.mulf %120, %119 : vector<8x128xf32>
    %122 = math.exp %121 : vector<8x128xf32>
    %123 = arith.addf %118, %122 : vector<8x128xf32>
    %cst_17 = arith.constant 1.000000e+00 : f32
    %124 = vector.broadcast %cst_17 : f32 to vector<8x128xf32>
    %125 = arith.subf %124, %123 : vector<8x128xf32>
    %cst_18 = arith.constant 1.000000e+01 : f32
    %126 = vector.broadcast %cst_18 : f32 to vector<8x128xf32>
    %127 = arith.mulf %126, %125 : vector<8x128xf32>
    %c0_19 = arith.constant 0 : index
    %c0_20 = arith.constant 0 : index
    %c0_21 = arith.constant 0 : index
    %128 = vector.load %arg4[%c0_19, %c0_20, %c0_21] : memref<1x8x128xf32, #tpu.memory_space<vmem>>, vector<1x8x128xf32>
    %129 = vector.shape_cast %128 : vector<1x8x128xf32> to vector<8x128xf32>
    %130 = vector.shape_cast %127 : vector<8x128xf32> to vector<1x8x128xf32>
    tpu.vector_store %arg4[%c0_19, %c0_20, %c0_21], %130 {strides = array<i32>} : memref<1x8x128xf32, #tpu.memory_space<vmem>>, vector<1x8x128xf32>,
    return
  }
  func.func @transform_0(%arg0: i32, %arg1: i32) -> (i32, i32, i32) {
    %c0_i32 = arith.constant 0 : i32
    %c0_i32_0 = arith.constant 0 : i32
    return %arg0, %c0_i32, %arg1 : i32, i32, i32
  }
  func.func @transform_1(%arg0: i32, %arg1: i32) -> (i32, i32, i32) {
    %c0_i32 = arith.constant 0 : i32
    %c0_i32_0 = arith.constant 0 : i32
    %c0_i32_1 = arith.constant 0 : i32
    return %arg0, %c0_i32, %c0_i32_0 : i32, i32, i32
  }
  func.func @transform_2(%arg0: i32, %arg1: i32) -> (i32, i32, i32) {
    %c0_i32 = arith.constant 0 : i32
    %c0_i32_0 = arith.constant 0 : i32
    return %arg0, %c0_i32, %arg1 : i32, i32, i32
  }
}

</mosaic_0001>

<bundles_post_ra>
// kernel: tpu_custom_call.1
= control target key start
LH: loop header
LB: loop body
LE: loop exit
PB: predicated region body
PF: predicated region fallthrough
CT: control target
= control target key end

     0   :  { %7 = vsyncpa [#allocation3], 0  ;;  %s879_s0 = inlined_call_operand.vmem [shape: f32[2,3,384], index: 0, kind: input, shape index: {}]   ;;  %s880_s1 = inlined_call_operand.vmem [shape: f32[2,8,20], index: 1, kind: input, shape index: {}]   ;;  %s881_s2 = inlined_call_operand.hbm [shape: f32[2,8,384], index: 2, kind: output, shape index: {}]  }
   0x1   :  { %9 = vsyncpa [#allocation3 + $0x1], 0  ;;  %s735_s9 = smov 0   ;;  %s737_s10 = smov 0  }
   0x2   :  { %s739_s11 = smov 0   ;;  %s741_s12 = smov 0  }
   0x3   :  { %s743_s13 = smov 0   ;;  %s745_s14 = smov 0  }
   0x4   :  { %s747_s15 = smov 0   ;;  %s749_s16 = smov 0  }
   0x5 LB: > { %s455_s17 = sadd.s32 4294967295, %s696_s16   ;;  %s456_s18 = sadd.s32 4294967294, %s696_s16   ;;  %s696_s16 = sphi %s749_s16, %s15_s16   ;;  %s692_s15 = sphi %s747_s15, %s890_s15   ;;  %s688_s14 = sphi %s745_s14, %s889_s14   ;;  %s684_s13 = sphi %s743_s13, %s888_s13   ;;  %s680_s12 = sphi %s741_s12, %s887_s12   ;;  %s676_s11 = sphi %s739_s11, %s886_s11   ;;  %s672_s10 = sphi %s737_s10, %s885_s10   ;;  %s668_s9 = sphi %s735_s9, %s884_s9  }
   0x6   : > { %s24_s19 = sadd.s32 1, %s688_s14  ;;  %s27_s20 = sadd.s32 1, %s692_s15 }
   0x7   : > { %p25_p0 = scmp.ge.s32.totalorder %s24_s19, 3  ;;  %p100_p1 = scmp.ne.s32.totalorder %s676_s11, %s672_s10 }
   0x8   : > { %p101_p2 = scmp.eq.s32.totalorder %s455_s17, 5  ;;  %p106_p5 = scmp.ne.s32.totalorder %s672_s10, %s668_s9 }
   0x9   : > { %s892_s19 = smov (%p25_p0, %s24_s19), 0  ;;  %s894_s20 = smov (!%p25_p0, %s27_s20), %s692_s15 }
   0xa   : > { %s86_s21 = ssub.s32 %s688_s14, %s892_s19  ;;  %p786_p3 = por %p101_p2, %p100_p1 }
   0xb   : > { %p29_p4 = scmp.ge.s32.totalorder %s894_s20, 2  ;;  %p107_p6 = scmp.eq.s32.totalorder %s456_s18, 5 }
   0xc   : > { %p459_p7 = scmp.ge.s32.totalorder %s696_s16, 1  ;;  %p143_p9 = scmp.lt.s32.totalorder %s696_s16, 7 }
   0xd   : > { %s896_s20 = smov (%p29_p4, %s894_s20), 0  ;;  %p795_p8 = por %p107_p6, %p106_p5 }
   0xe   : > { %s85_s24 = ssub.s32 %s692_s15, %s896_s20  ;;  %s90_s25 = sadd.s32 1, %s676_s11 }
   0xf   : > { %s87_s26 = sor.u32 %s86_s21, %s85_s24  ;;  %p144_p10 = pnand %p459_p7, %p143_p9 }
  0x10   : > { %p88_p11 = scmp.eq.s32.totalorder %s87_s26, 0  ;;  %p172_p12 = scmp.lt.s32.totalorder (!%p144_p10), %s684_s13, 1  ;;  %v698_v0 = vmov (!%p144_p10), 8   ;;  %v699_v1 = vmov (!%p144_p10), 6   ;;  %v700_v3 = vmov (!%p144_p10), 11   ;;  %v701_v4 = vmov (!%p144_p10), 7  }
  0x11   : > { %147 = sbr.rel (%p144_p10) target bundleno = 287 (0x11f), region = 28  ;;  %563 = vset.pattern.permute.xlu1 (!%p144_p10), %v698_v0  ;;  %561 = vset.pattern.permute.xlu0 (!%p144_p10), %v699_v1  ;;  %v702_v5 = vmov (!%p144_p10), 15   ;;  %v703_v6 = vmov (!%p144_p10), 16   ;;  %v704_v7 = vmov (!%p144_p10), 0   ;;  %v705_v8 = vmov (!%p144_p10), 3   ;;  %p174_p13 = scmp.lt.s32.totalorder (!%p144_p10), %s680_s12, 2 }
  0x12   : > { %s804_s27 = scalar_select %p88_p11, %s676_s11, %s90_s25  }
  0x13   : > { %v706_v9 = vmov (!%p144_p10), 1   ;;  %v707_v10 = vmov (!%p144_p10), 5   ;;  %v708_v11 = vmov (!%p144_p10), 4   ;;  %v709_v12 = vmov (!%p144_p10), 12   ;;  %s169_s24 = sand.u32 (!%p144_p10), 1, %s672_s10   ;;  %s468_s25 = smul.u32 (!%p144_p10), 3, %s684_s13 }
  0x14   : > { %v710_v13 = vmov (!%p144_p10), 2   ;;  %v711_v14 = vmov (!%p144_p10), 14   ;;  %v712_v15 = vmov (!%p144_p10), 9   ;;  %v713_v16 = vmov (!%p144_p10), 19   ;;  %s460_s26 = sshll.u32 (!%p144_p10), %s169_s24, 3 }
  0x15   : > { %v714_v17 = vmov (!%p144_p10), 10   ;;  %v715_v18 = vmov (!%p144_p10), 13   ;;  %v716_v19 = vmov (!%p144_p10), 17   ;;  %v717_v20 = vmov (!%p144_p10), 18   ;;  %s171_s30 = scalar_lea.vmem (!%p144_p10), [#allocation2], %s460_s26 }
  0x16   : > { %v191_v22 = vlaneseq (!%p144_p10)  ;;  %v718_v26 = vmov (!%p144_p10), -1.0   ;;  %s365_s3 = sshll.u32 (!%p144_p10), %s171_s30, 4  ;;  %s828_s3 = int_to_ptr.vmem [resolvable:$true] %s365_s3 }
  0x18   : > { %s808_s28 = scalar_select %p172_p12, %s684_s13, 1  ;;  %v192_v24 = vshrl.u32 %v191_v22, 7 }
  0x19   : > { %s175_s5 = scalar_select %p174_p13, %s680_s12, 2 }
  0x1a   : > { %s462_s29 = sshll.u32 %s808_s28, 3  ;;  %s467_s6 = smul.u32 3, %s808_s28  ;;  %v193_v28 = vsub.s32 0, %v192_v24  ;;  %v197_v30 = vsub.s32 1, %v192_v24  ;;  %v201_v31 = vsub.s32 2, %v192_v24 }
  0x1b   : > { %s183_s4 = scalar_lea.vmem %s880_s1, %s462_s29  ;;  %s361_s28 = sadd.s32 %s680_s12, %s468_s25 }
  0x1c   : > { %v185_v2 = vld [vmem:[%s183_s4] sm:$0xff]  ;;  %s177_s7 = sadd.s32 %s467_s6, %s175_s5  ;;  %s464_s29 = sshll.u32 %s361_s28, 7 }
  0x1d   : > { %260 = vperm.xlu1 %563, %v185_v2   ;;  %249 = vperm.xlu0 %561, %v185_v2   ;;  %s461_s8 = sshll.u32 %s177_s7, 2  ;;  %s826_s6 = scalar_lea.hbm %s881_s2, %s464_s29 }
  0x1e   : > { %s179_s21 = scalar_lea.vmem %s879_s0, %s461_s8  ;;  %s350_s13 = scalar_lea.sflag [#allocation3], %s169_s24 }
  0x1f   : > { %v184_v21 = vld [vmem:[%s179_s21] sm:$0x7]  ;;  %s602_s12 = scalar_lea.vmem %s828_s3, 128  ;;  %s719_s7 = smov [#allocation2]  }
  0x20   : > { %v188_v23 = vand.u32 2147483647, %v184_v21  ;;  %vm186_vm0 = vcmp.gt.f32.partialorder %v184_v21, 0.0  ;;  %p603_p0 = scmp.ne.s32.totalorder %s828_s3, %s602_s12  ;;  %s606_s8 = sshll.u32 %s719_s7, 4  ;;  %s607_s8 = int_to_ptr.vmem [resolvable:$false] %s606_s8 }
  0x21   : > { %564 = vset.pattern.permute.xlu1 %v700_v3  ;;  %562 = vset.pattern.permute.xlu0 %v701_v4  ;;  %v187_v27 = vsel %vm186_vm0, 1.0, %v718_v26  ;;  %s608_s17 = scalar_lea.vmem %s607_s8, 256  ;;  %p609_p4 = scmp.lt.s32.totalorder %s828_s3, %s607_s8 }
  0x22   : > { %266 = vperm.xlu1 %564, %v185_v2   ;;  %254 = vperm.xlu0 %562, %v185_v2   ;;  %v189_v25 = vmax.f32 %v188_v23, 1e-06  ;;  %p604_p1 = pnand %p603_p0, %p786_p3  ;;  %p610_p5 = scmp.lt.s32.totalorder %s608_s17, %s602_s12 }
  0x24   : > { %v190_v29 = vmul.f32 %v189_v25, %v187_v27  ;;  %p605_p2 = pneg %p604_p1  ;;  %p611_p6 = por %p610_p5, %p609_p4 }
  0x26   : > { %565 = vset.pattern.permute.xlu1 %v702_v5  ;;  %566 = vset.pattern.permute.xlu0 %v703_v6  ;;  %v194_v34 = vrot.slane %v190_v29, %v193_v28  ;;  %v198_v35 = vrot.slane %v190_v29, %v197_v30  ;;  %v202_v36 = vrot.slane %v190_v29, %v201_v31  ;;  %p612_p7 = pnand %p611_p6, %p605_p2 }
  0x27   : > { %272 = vperm.xlu1 %565, %v185_v2   ;;  %289 = vperm.xlu0 %566, %v185_v2  }
  0x2b   : > { %567 = vset.pattern.permute.xlu1 %v704_v7  ;;  %569 = vset.pattern.permute.xlu0 %v705_v8 }
  0x2c   : > { %205 = vperm.xlu1 %567, %v185_v2   ;;  %227 = vperm.xlu0 %569, %v185_v2  }
  0x30   : > { %568 = vset.pattern.permute.xlu1 %v706_v9  ;;  %572 = vset.pattern.permute.xlu0 %v707_v10 }
  0x31   : > { %210 = vperm.xlu1 %568, %v185_v2   ;;  %238 = vperm.xlu0 %572, %v185_v2  }
  0x35   : > { %570 = vset.pattern.permute.xlu1 %v708_v11  ;;  %575 = vset.pattern.permute.xlu0 %v709_v12 }
  0x36   : > { %232 = vperm.xlu1 %570, %v185_v2   ;;  %282 = vperm.xlu0 %575, %v185_v2  }
  0x3a   : > { %571 = vset.pattern.permute.xlu1 %v710_v13  ;;  %578 = vset.pattern.permute.xlu0 %v711_v14 }
  0x3b   : > { %216 = vperm.xlu1 %571, %v185_v2   ;;  %306 = vperm.xlu0 %578, %v185_v2  }
  0x3f   : > { %573 = vset.pattern.permute.xlu1 %v712_v15  ;;  %581 = vset.pattern.permute.xlu0 %v713_v16 }
  0x40   : > { %222 = vperm.xlu1 %573, %v185_v2  }
  0x44   : > { %574 = vset.pattern.permute.xlu1 %v714_v17 }
  0x45   : > { %244 = vperm.xlu1 %574, %v185_v2  }
  0x49   : > { %576 = vset.pattern.permute.xlu1 %v715_v18 }
  0x4a   : > { %299 = vperm.xlu1 %576, %v185_v2  }
  0x4e   : > { %577 = vset.pattern.permute.xlu1 %v716_v19 }
  0x4f   : > { %312 = vperm.xlu1 %577, %v185_v2  }
  0x53   : > { %579 = vset.pattern.permute.xlu1 %v717_v20 }
  0x54   : > { %330 = vperm.xlu1 %579, %v185_v2  }
  0x58   : > { %580 = vset.pattern.permute.xlu1 %v713_v16 }
  0x59   : > { %339 = vperm.xlu1 %580, %v185_v2  }
  0x9c   : > { %v261_v32 = vpop.permute.xlu1 %260  ;;  %v250_v33 = vpop.permute.xlu0 %249 }
  0x9d   : > { %v252_v37 = vmul.f32 %v250_v33, %v194_v34  ;;  %v263_v41 = vmul.f32 %v261_v32, %v202_v36 }
  0xa1   : > { %v267_v38 = vpop.permute.xlu1 %266  ;;  %v255_v39 = vpop.permute.xlu0 %254 }
  0xa2   : > { %v257_v40 = vmul.f32 %v255_v39, %v198_v35 }
  0xa4   : > { %v258_v42 = vadd.f32 %v257_v40, %v252_v37 }
  0xa6   : > { %v264_v43 = vadd.f32 %v263_v41, %v258_v42  ;;  %v273_v44 = vpop.permute.xlu1 %272  ;;  %v290_v47 = vpop.permute.xlu0 %289 }
  0xa8   : > { %v269_v45 = vsub.f32 %v264_v43, %v267_v38 }
  0xaa   : > { %v275_v46 = vmul.f32 %v273_v44, %v269_v45  ;;  %v292_v50 = vmul.f32 %v290_v47, %v269_v45  ;;  %v304_v32 = vand.u32 2147483647, %v269_v45 }
  0xab   : > { %v206_v48 = vpop.permute.xlu1 %205  ;;  %v228_v58 = vpop.permute.xlu0 %227 }
  0xac   : > { %v276_v49 = vadd.f32 1.0, %v275_v46  ;;  %v293_v53 = vadd.f32 1.0, %v292_v50  ;;  %v208_v59 = vmul.f32 %v206_v48, %v194_v34  ;;  %v230_v62 = vmul.f32 %v228_v58, %v194_v34 }
  0xae   : > { %v277_v52 = vand.u32 2147483647, %v276_v49  ;;  %v294_v56 = vand.u32 2147483647, %v293_v53 }
  0xb0   : > { %v211_v51 = vpop.permute.xlu1 %210  ;;  %v278_v54 = vmax.f32 %v277_v52, 1e-06  ;;  %v295_v60 = vmax.f32 %v294_v56, 1e-06  ;;  %v239_v3 = vpop.permute.xlu0 %238 }
  0xb1   : > { %v213_v57 = vmul.f32 %v211_v51, %v198_v35  ;;  %v241_v4 = vmul.f32 %v239_v3, %v202_v36 }
  0xb2   : > { %582 = vrcp.f32 %v278_v54 }
  0xb3   : > { %v214_v63 = vadd.f32 %v213_v57, %v208_v59  ;;  %584 = vrcp.f32 %v295_v60 }
  0xb5   : > { %v233_v55 = vpop.permute.xlu1 %232  ;;  %v283_v13 = vpop.permute.xlu0 %282 }
  0xb6   : > { %v235_v0 = vmul.f32 %v233_v55, %v198_v35 }
  0xb8   : > { %v236_v5 = vadd.f32 %v235_v0, %v230_v62 }
  0xba   : > { %v217_v61 = vpop.permute.xlu1 %216  ;;  %v242_v10 = vadd.f32 %v241_v4, %v236_v5  ;;  %v307_v31 = vpop.permute.xlu0 %306 }
  0xbb   : > { %v219_v1 = vmul.f32 %v217_v61, %v202_v36  ;;  %v309_v34 = vmul.f32 %v307_v31, %v304_v32 }
  0xbc   : > { %v583_v9 = vpop.eup %582 }
  0xbd   : > { %v220_v2 = vadd.f32 %v219_v1, %v214_v63  ;;  %v585_v17 = vpop.eup %584  ;;  %v310_v35 = vmax.f32 %v309_v34, 1e-06 }
  0xbf   : > { %v223_v6 = vpop.permute.xlu1 %222 }
  0xc0   : > { %v225_v7 = vsub.f32 %v220_v2, %v223_v6 }
  0xc2   : > { %v270_v8 = vand.u32 2147483647, %v225_v7 }
  0xc4   : > { %v280_v11 = vmul.f32 %v583_v9, %v270_v8  ;;  %v245_v12 = vpop.permute.xlu1 %244 }
  0xc5   : > { %v247_v14 = vsub.f32 %v242_v10, %v245_v12 }
  0xc6   : > { %v285_v15 = vmul.f32 %v283_v13, %v280_v11 }
  0xc7   : > { %v287_v16 = vand.u32 2147483647, %v247_v14 }
  0xc8   : > { %v286_v18 = vmax.f32 %v285_v15, 1e-06 }
  0xc9   : > { %v300_v19 = vpop.permute.xlu1 %299  ;;  %v297_v20 = vmul.f32 %v585_v17, %v287_v16 }
  0xca   : > { %586 = vlog2.f32 %v286_v18 }
  0xcb   : > { %v302_v21 = vmul.f32 %v300_v19, %v297_v20 }
  0xcd   : > { %v303_v22 = vmax.f32 %v302_v21, 1e-06 }
  0xce   : > { %v313_v25 = vpop.permute.xlu1 %312 }
  0xcf   : > { %588 = vlog2.f32 %v303_v22 }
  0xd3   : > { %v331_v40 = vpop.permute.xlu1 %330 }
  0xd4   : > { %v587_v23 = vpop.eup %586 }
  0xd5   : > { %v316_v24 = vmul.f32 0.6931472, %v587_v23 }
  0xd7   : > { %v317_v26 = vmul.f32 %v316_v24, %v313_v25 }
  0xd8   : > { %v340_v42 = vpop.permute.xlu1 %339 }
  0xd9   : > { %v589_v27 = vpop.eup %588  ;;  %v318_v29 = vmul.f32 1.442695, %v317_v26 }
  0xda   : > { %v321_v28 = vmul.f32 0.6931472, %v589_v27 }
  0xdb   : > { %590 = vpow2.f32 %v318_v29 }
  0xdc   : > { %v322_v30 = vmul.f32 %v321_v28, %v313_v25 }
  0xde   : > { %v323_v33 = vmul.f32 1.442695, %v322_v30 }
  0xe0   : > { %592 = vpow2.f32 %v323_v33 }
  0xe1   : > { %594 = vlog2.f32 %v310_v35 }
  0xe5   : > { %v591_v36 = vpop.eup %590 }
  0xea   : > { %v593_v37 = vpop.eup %592 }
  0xeb   : > { %v325_v38 = vadd.f32 %v593_v37, %v591_v36  ;;  %v595_v41 = vpop.eup %594 }
  0xec   : > { %v337_v43 = vmul.f32 0.6931472, %v595_v41 }
  0xed   : > { %v326_v39 = vmax.f32 %v325_v38, 1e-06 }
  0xee   : > { %v342_v44 = vmul.f32 %v340_v42, %v337_v43 }
  0xef   : > { %596 = vlog2.f32 %v326_v39 }
  0xf0   : > { %v343_v47 = vmul.f32 1.442695, %v342_v44 }
  0xf2   : > { %598 = vpow2.f32 %v343_v47 }
  0xf9   : > { %v597_v45 = vpop.eup %596 }
  0xfa   : > { %v328_v46 = vmul.f32 0.6931472, %v597_v45 }
  0xfc   : > { %v333_v48 = vmul.f32 %v331_v40, %v328_v46  ;;  %v599_v50 = vpop.eup %598 }
  0xfe   : > { %v334_v49 = vmul.f32 1.442695, %v333_v48 }
 0x100   : > { %600 = vpow2.f32 %v334_v49 }
 0x10a   : > { %v601_v51 = vpop.eup %600 }
 0x10b   : > { %v345_v52 = vadd.f32 %v601_v51, %v599_v50 }
 0x10d   : > { %v346_v53 = vsub.f32 1.0, %v345_v52 }
 0x10f   : > { %v347_v54 = vmul.f32 10.0, %v346_v53 }
 0x111   : > { %348 = vst [vmem:[%s171_s30] sm:$0xff] %v347_v54 }
 0x112   : > { %615 = shalt.err (!%p612_p7)
}
 0x113   : > { %s616_s18 = scalar_lea.hbm %s826_s6, 128  ;;  %s620_s25 = scalar_lea.hbm %s881_s2, 768 }
 0x114   : > { %p617_p9 = scmp.ne.s32.totalorder %s826_s6, %s616_s18  ;;  %p621_p12 = scmp.lt.u32.totalorder %s826_s6, %s881_s2 }
 0x115   : > { %p622_p13 = scmp.lt.u32.totalorder %s620_s25, %s616_s18  ;;  %p624_p1 = scmp.lt.u32.totalorder %s616_s18, %s826_s6 }
 0x116   : > { %p618_p10 = pnand %p617_p9, %p786_p3 }
 0x117   : > { %p623_p0 = por %p622_p13, %p621_p12 }
 0x118   : > { %p619_p11 = pneg %p618_p10 }
 0x119   : > { %p625_p2 = por %p624_p1, %p623_p0 }
 0x11b   : > { %p626_p4 = pnand %p625_p2, %p619_p11 }
 0x11d   : > { %629 = shalt.err (!%p626_p4)
}
 0x11e   : > { %469 = dma.vmem_to_hbm [thread:$0]  (%p786_p3), %s828_s3, 128, %s826_s6, %s350_s13  }
 0x11f PF: > { %p475_p5 = scmp.ge.s32.totalorder %s696_s16, 2  ;;  %s377_s29 = sand.u32 1, %s668_s9  }
 0x120   : > { %s378_s30 = scalar_lea.sflag [#allocation3], %s377_s29 }
 0x121   : > { %p472_p6 = pnand %p475_p5, %p795_p8 }
 0x123   : > { %663 = dma.done.wait (!%p472_p6), %s378_s30, 128  }
 0x124   : > { %665 = vsyncadd (!%p472_p6), %s378_s30, 4294967168  ;;  %s15_s16 = sadd.s32 1, %s696_s16   ;;  %s884_s9 = smov %s672_s10 }
 0x125   : > { %p12_p7 = scmp.ge.s32.totalorder %s15_s16, 8   ;;  %s885_s10 = smov %s676_s11 }
 0x126   : > { %s886_s11 = smov %s804_s27  ;;  %s887_s12 = smov %s688_s14 }
 0x127   : > { %s888_s13 = smov %s692_s15  ;;  %s889_s14 = smov %s892_s19 }
 0x128   : > { %s890_s15 = smov %s896_s20  ;;  %14 = sbr.rel (!%p12_p7) target bundleno = 5 (0x5), region = 66 }
 0x12f   :  { %383 = vsyncpa [#allocation3], 1 }
 0x130   :  { %385 = vsyncpa [#allocation3 + $0x1], 1 }

</bundles_post_ra>
